<compile_context>
chip_gen: v7x
topology: tpu7x:2x2x1
jax: 0.10.0
libtpu: 0.0.40
codegen_flags: <defaults>
</compile_context>

<pallas_src>
import functools

import jax
import jax.numpy as jnp
from jax.experimental import pallas as pl
from jax.experimental.pallas import tpu as pltpu

LANE = 128      # TPU lane width -> make every last dim 128-dense
SUBLANE = 8
BN_EPS = 1e-5


def _round_up(v, m):
    return (v + m - 1) // m * m


def _activation_dtype():
    """bf16 inter-layer activations on v6e/v7x (native bf16 VPU), f32 elsewhere."""
    try:
        kind = jax.devices()[0].device_kind.lower()
    except Exception:
        return jnp.float32
    if "v6" in kind or "v7" in kind:
        return jnp.bfloat16
    return jnp.float32


# -----------------------------------------------------------------------------
# Fused kernel: in_mlp -> convolute -> out_mlp, all VMEM/vreg resident.
# -----------------------------------------------------------------------------
def _fused_forward_kernel(a_ref, x_ref, w_ref, shift_ref, o_ref,
                          *, in_layers, out_layers, num_hops, n_valid):
    act_dtype = shift_ref.dtype
    x = x_ref[...]                       # bf16, consumed directly by the MXU

    def mlp_layer(x, l):
        # Linear with BN scale pre-folded into W (bf16 MXU, f32 accumulate),
        # then fused BN-shift + ReLU epilogue in act_dtype.
        y = jnp.dot(x.astype(jnp.bfloat16), w_ref[l],
                    preferred_element_type=jnp.float32)
        return jnp.maximum(y.astype(act_dtype) + shift_ref[l], 0.0)

    # ---- in_mlp (static unroll: layer count is tiny & static) ----
    for l in range(in_layers):
        x = mlp_layer(x, l)

    # ---- convolute: out = sum_{k=0..num_hops} A_hat^k x ----
    # (dropout_conv is identity in eval mode).  Kept in f32 so error does not
    # compound multiplicatively over the hop chain.
    a = a_ref[...]                       # f32
    x_cur = x.astype(jnp.float32)
    acc = x_cur
    for _ in range(num_hops):
        x_cur = jnp.dot(a, x_cur, preferred_element_type=jnp.float32)
        acc = acc + x_cur
    x = acc.astype(act_dtype)

    # ---- out_mlp (plain_last=False -> norm+act on last layer too) ----
    for l in range(in_layers, in_layers + out_layers):
        x = mlp_layer(x, l)

    # ---- zero padded node rows so no epilogue garbage leaves the kernel ----
    if n_valid < x.shape[0]:
        row = jax.lax.broadcasted_iota(jnp.int32, x.shape, 0)
        x = jnp.where(row < n_valid, x, jnp.zeros_like(x))

    o_ref[...] = x.astype(o_ref.dtype)


# -----------------------------------------------------------------------------
# One-time host-side precompute (hoisted OUT of the jitted forward path):
# BN-fold + padding into lane-dense (128) slabs.
# -----------------------------------------------------------------------------
def _fold_and_pad_params(params, fp, act_dtype):
    """Stack per-layer Linear+BN(eval) params into padded slabs.

    BN scale is folded into the weight columns (in f32, before the bf16 cast).
    Returns (W [L, fp, fp] bf16, shift [L, 1, fp] act_dtype).
    Padded output columns get shift=0 so they stay exactly zero pre-ReLU.
    """
    L = len(params)
    w_stack = jnp.zeros((L, fp, fp), jnp.bfloat16)
    shift_stack = jnp.zeros((L, 1, fp), act_dtype)
    for l, (w, b, gamma, beta, rmean, rvar) in enumerate(params):
        f_in, f_out = w.shape
        bn_scale = gamma / jnp.sqrt(rvar + BN_EPS)          # f32
        w_folded = w * bn_scale[None, :]                    # fold scale into W
        shift = (b - rmean) * bn_scale + beta
        w_stack = w_stack.at[l, :f_in, :f_out].set(w_folded.astype(jnp.bfloat16))
        shift_stack = shift_stack.at[l, 0, :f_out].set(shift.astype(act_dtype))
    return w_stack, shift_stack


def _pad2d(x, rows, cols, dtype):
    out = jnp.zeros((rows, cols), dtype)
    return out.at[:x.shape[0], :x.shape[1]].set(x.astype(dtype))


def prepare_base_nn_inputs(x, a_hat, in_params, out_params, act_dtype):
    """Run once per model/graph; returns padded slabs + static meta."""
    n, _ = x.shape
    params = list(in_params) + list(out_params)
    f_out = params[-1][0].shape[1]

    all_dims = [p[0].shape[0] for p in params] + [p[0].shape[1] for p in params]
    fp = _round_up(max(all_dims + [1]), LANE)
    n_pad = _round_up(max(n, SUBLANE), LANE)

    a_pad = _pad2d(a_hat, n_pad, n_pad, jnp.float32)        # f32 hop matmuls
    x_pad = _pad2d(x, n_pad, fp, jnp.bfloat16)              # bf16 MXU input
    w_stack, shift_stack = _fold_and_pad_params(params, fp, act_dtype)

    meta = dict(n=n, f_out=f_out,
                in_layers=len(in_params), out_layers=len(out_params))
    return a_pad, x_pad, w_stack, shift_stack, meta


# -----------------------------------------------------------------------------
# Jitted forward: single fused pallas_call on the precomputed slabs.
# -----------------------------------------------------------------------------
def base_nn_forward_padded(a_pad, x_pad, w_stack, shift_stack, *,
                           in_layers, out_layers, num_hops, n_valid, f_out):
    n_pad, fp = x_pad.shape

    kernel = functools.partial(_fused_forward_kernel,
                               in_layers=in_layers,
                               out_layers=out_layers,
                               num_hops=num_hops,
                               n_valid=n_valid)
    vmem_spec = pl.BlockSpec(memory_space=pltpu.MemorySpace.VMEM)

    # VMEM budget sized from the actual slabs (+ output + generous headroom).
    operand_bytes = sum(int(a.size) * a.dtype.itemsize
                        for a in (a_pad, x_pad, w_stack, shift_stack))
    operand_bytes += n_pad * fp * 4                      # f32 output slab
    vmem_limit = min(128 << 20, max(3 * operand_bytes, 16 << 20))

    out_pad = pl.pallas_call(
        kernel,
        out_shape=jax.ShapeDtypeStruct((n_pad, fp), jnp.float32),
        in_specs=[vmem_spec] * 4,
        out_specs=vmem_spec,
        compiler_params=pltpu.CompilerParams(vmem_limit_bytes=int(vmem_limit)),
    )(a_pad, x_pad, w_stack, shift_stack)

    return out_pad[:n_valid, :f_out]


# -----------------------------------------------------------------------------
# Pure-JAX f32 reference (for correctness check)
# -----------------------------------------------------------------------------
def base_nn_forward_ref(x, a_hat, in_params, out_params, num_hops):
    def mlp(x, params):
        for (w, b, g, bt, rm, rv) in params:
            s = g / jnp.sqrt(rv + BN_EPS)
            x = jnp.maximum((x @ w) * s + (b - rm) * s + bt, 0.0)
        return x
    x = mlp(x, in_params)
    acc, xc = x, x
    for _ in range(num_hops):
        xc = a_hat @ xc
        acc = acc + xc
    return mlp(acc, out_params)


# -----------------------------------------------------------------------------
# Config / parameter construction / adjacency normalization
# -----------------------------------------------------------------------------
def init_channel_list(in_ch, hid_ch, out_ch, in_layers, out_layers, conv_layers):
    total = in_layers + conv_layers + out_layers
    cl = [in_ch] + [None] * (total - 1) + [out_ch]
    for i in range(in_layers - 1):
        cl[i + 1] = hid_ch
    if in_layers > 0:
        cl[in_layers] = hid_ch if out_layers > 0 else out_ch
    for i in range(conv_layers):
        cl[in_layers + i + 1] = cl[in_layers]
    for i in range(out_layers - 1):
        cl[in_layers + conv_layers + i + 1] = hid_ch
    return cl


def make_mlp_params(key, channel_list):
    """Deterministic Linear + BatchNorm1d params for each MLP layer."""
    params = []
    for f_in, f_out in zip(channel_list[:-1], channel_list[1:]):
        key, kw, kb = jax.random.split(key, 3)
        bound = 1.0 / jnp.sqrt(jnp.float32(f_in))
        w = jax.random.uniform(kw, (f_in, f_out), jnp.float32, -bound, bound)
        b = jax.random.uniform(kb, (f_out,), jnp.float32, -bound, bound)
        gamma = jnp.ones((f_out,), jnp.float32)
        beta = jnp.zeros((f_out,), jnp.float32)
        rmean = jnp.zeros((f_out,), jnp.float32)
        rvar = jnp.ones((f_out,), jnp.float32)
        params.append((w, b, gamma, beta, rmean, rvar))
    return params, key


def normalized_adjacency(edge_index, num_nodes):
    """get_propagate_mat: dense D^-1/2 (A + I) D^-1/2 (symmetric, self-loops).

    Pre-existing self-loops are dropped before adding I so the diagonal weight
    is exactly 1 (matches gcn_norm's add_self_loops semantics).
    """
    src, dst = edge_index
    a = jnp.zeros((num_nodes, num_nodes), jnp.float32)
    a = a.at[src, dst].set(1.0)
    a = jnp.maximum(a, a.T)                                  # symmetrize
    eye = jnp.eye(num_nodes, dtype=jnp.float32)
    a = jnp.where(eye > 0, 0.0, a) + eye                     # clean self loops
    deg = jnp.sum(a, axis=1)
    dinv = jax.lax.rsqrt(jnp.maximum(deg, 1e-12))
    return a * dinv[:, None] * dinv[None, :]


if __name__ == "__main__":
    # Small, deterministic configuration.
    num_nodes = 64
    in_channels, hidden_channels, out_channels = 16, 32, 8
    in_layers, out_layers, num_hops = 2, 1, 3
    conv_layers = num_hops + 1

    key = jax.random.PRNGKey(0)
    key, kx, ke = jax.random.split(key, 3)

    x = jax.random.normal(kx, (num_nodes, in_channels), jnp.float32)
    num_edges = 256
    edge_index = jax.random.randint(ke, (2, num_edges), 0, num_nodes)

    channel_list = init_channel_list(in_channels, hidden_channels, out_channels,
                                     in_layers, out_layers, conv_layers)
    in_mlp_channels = channel_list[:in_layers + 1]
    out_mlp_channels = channel_list[in_layers + conv_layers:]

    in_params, key = make_mlp_params(key, in_mlp_channels)
    out_params, key = make_mlp_params(key, out_mlp_channels)

    a_hat = normalized_adjacency(edge_index, num_nodes)

    # One-time precompute (BN fold + lane-dense padding) — outside the jit path.
    act_dtype = _activation_dtype()
    a_pad, x_pad, w_stack, shift_stack, meta = prepare_base_nn_inputs(
        x, a_hat, in_params, out_params, act_dtype)

    fwd = jax.jit(functools.partial(
        base_nn_forward_padded,
        in_layers=meta["in_layers"], out_layers=meta["out_layers"],
        num_hops=num_hops, n_valid=meta["n"], f_out=meta["f_out"]))

    y = fwd(a_pad, x_pad, w_stack, shift_stack)
    y = jax.block_until_ready(y)

    y_ref = base_nn_forward_ref(x, a_hat, in_params, out_params, num_hops)

    assert y.shape == (num_nodes, out_channels)
    assert jnp.all(jnp.isfinite(y))
    # bf16 MXU inputs / bf16 activations vs f32 reference -> loose tolerance.
    assert jnp.allclose(y, y_ref, atol=1e-1, rtol=1e-1), (
        float(jnp.max(jnp.abs(y - y_ref))))
    print("KERNEL_OK")
</pallas_src>

<mosaic_0001>
module attributes {stable_mosaic.version = 11 : i64} {
  func.func @_fused_forward_kernel(%arg0: memref<128x128xf32, #tpu.memory_space<vmem>>, %arg1: memref<128x128xbf16, #tpu.memory_space<vmem>>, %arg2: memref<3x128x128xbf16, #tpu.memory_space<vmem>>, %arg3: memref<3x1x128xf32, #tpu.memory_space<vmem>>, %arg4: memref<128x128xf32, #tpu.memory_space<vmem>>) attributes {dimension_semantics = [], scalar_prefetch = 0 : i64, scratch_operands = 0 : i64, tpu.core_type = #tpu.core_type<tc>} {
    %c0 = arith.constant 0 : index
    %c0_0 = arith.constant 0 : index
    %0 = vector.load %arg1[%c0, %c0_0] : memref<128x128xbf16, #tpu.memory_space<vmem>>, vector<128x128xbf16>
    %c0_1 = arith.constant 0 : index
    %c0_2 = arith.constant 0 : index
    %c0_3 = arith.constant 0 : index
    %1 = vector.load %arg2[%c0_1, %c0_2, %c0_3] : memref<3x128x128xbf16, #tpu.memory_space<vmem>>, vector<1x128x128xbf16>
    %2 = vector.shape_cast %1 : vector<1x128x128xbf16> to vector<128x128xbf16>
    %cst = arith.constant dense<0.000000e+00> : vector<128x128xf32>
    %3 = tpu.matmul %0, %2, %cst {dimension_numbers = #tpu.dot_dimension_numbers<[1], [0], [0], [1], [0, 0, 1, 1], [], []>} : vector<128x128xbf16>, vector<128x128xbf16>, vector<128x128xf32> -> vector<128x128xf32>
    %c0_4 = arith.constant 0 : index
    %c0_5 = arith.constant 0 : index
    %c0_6 = arith.constant 0 : index
    %4 = vector.load %arg3[%c0_4, %c0_5, %c0_6] : memref<3x1x128xf32, #tpu.memory_space<vmem>>, vector<1x1x128xf32>
    %5 = vector.shape_cast %4 : vector<1x1x128xf32> to vector<1x128xf32>
    %6 = vector.broadcast %5 : vector<1x128xf32> to vector<128x128xf32>
    %7 = arith.addf %3, %6 : vector<128x128xf32>
    %cst_7 = arith.constant 0.000000e+00 : f32
    %8 = vector.broadcast %cst_7 : f32 to vector<128x128xf32>
    %9 = arith.maximumf %7, %8 : vector<128x128xf32>
    %10 = arith.truncf %9 : vector<128x128xf32> to vector<128x128xbf16>
    %c1 = arith.constant 1 : index
    %c0_8 = arith.constant 0 : index
    %c0_9 = arith.constant 0 : index
    %11 = vector.load %arg2[%c1, %c0_8, %c0_9] : memref<3x128x128xbf16, #tpu.memory_space<vmem>>, vector<1x128x128xbf16>
    %12 = vector.shape_cast %11 : vector<1x128x128xbf16> to vector<128x128xbf16>
    %cst_10 = arith.constant dense<0.000000e+00> : vector<128x128xf32>
    %13 = tpu.matmul %10, %12, %cst_10 {dimension_numbers = #tpu.dot_dimension_numbers<[1], [0], [0], [1], [0, 0, 1, 1], [], []>} : vector<128x128xbf16>, vector<128x128xbf16>, vector<128x128xf32> -> vector<128x128xf32>
    %c1_11 = arith.constant 1 : index
    %c0_12 = arith.constant 0 : index
    %c0_13 = arith.constant 0 : index
    %14 = vector.load %arg3[%c1_11, %c0_12, %c0_13] : memref<3x1x128xf32, #tpu.memory_space<vmem>>, vector<1x1x128xf32>
    %15 = vector.shape_cast %14 : vector<1x1x128xf32> to vector<1x128xf32>
    %16 = vector.broadcast %15 : vector<1x128xf32> to vector<128x128xf32>
    %17 = arith.addf %13, %16 : vector<128x128xf32>
    %cst_14 = arith.constant 0.000000e+00 : f32
    %18 = vector.broadcast %cst_14 : f32 to vector<128x128xf32>
    %19 = arith.maximumf %17, %18 : vector<128x128xf32>
    %c0_15 = arith.constant 0 : index
    %c0_16 = arith.constant 0 : index
    %20 = vector.load %arg0[%c0_15, %c0_16] : memref<128x128xf32, #tpu.memory_space<vmem>>, vector<128x128xf32>
    %cst_17 = arith.constant dense<0.000000e+00> : vector<128x128xf32>
    %21 = tpu.matmul %20, %19, %cst_17 {dimension_numbers = #tpu.dot_dimension_numbers<[1], [0], [0], [1], [0, 0, 1, 1], [], []>} : vector<128x128xf32>, vector<128x128xf32>, vector<128x128xf32> -> vector<128x128xf32>
    %22 = arith.addf %19, %21 : vector<128x128xf32>
    %cst_18 = arith.constant dense<0.000000e+00> : vector<128x128xf32>
    %23 = tpu.matmul %20, %21, %cst_18 {dimension_numbers = #tpu.dot_dimension_numbers<[1], [0], [0], [1], [0, 0, 1, 1], [], []>} : vector<128x128xf32>, vector<128x128xf32>, vector<128x128xf32> -> vector<128x128xf32>
    %24 = arith.addf %22, %23 : vector<128x128xf32>
    %cst_19 = arith.constant dense<0.000000e+00> : vector<128x128xf32>
    %25 = tpu.matmul %20, %23, %cst_19 {dimension_numbers = #tpu.dot_dimension_numbers<[1], [0], [0], [1], [0, 0, 1, 1], [], []>} : vector<128x128xf32>, vector<128x128xf32>, vector<128x128xf32> -> vector<128x128xf32>
    %26 = arith.addf %24, %25 : vector<128x128xf32>
    %27 = arith.truncf %26 : vector<128x128xf32> to vector<128x128xbf16>
    %c2 = arith.constant 2 : index
    %c0_20 = arith.constant 0 : index
    %c0_21 = arith.constant 0 : index
    %28 = vector.load %arg2[%c2, %c0_20, %c0_21] : memref<3x128x128xbf16, #tpu.memory_space<vmem>>, vector<1x128x128xbf16>
    %29 = vector.shape_cast %28 : vector<1x128x128xbf16> to vector<128x128xbf16>
    %cst_22 = arith.constant dense<0.000000e+00> : vector<128x128xf32>
    %30 = tpu.matmul %27, %29, %cst_22 {dimension_numbers = #tpu.dot_dimension_numbers<[1], [0], [0], [1], [0, 0, 1, 1], [], []>} : vector<128x128xbf16>, vector<128x128xbf16>, vector<128x128xf32> -> vector<128x128xf32>
    %c2_23 = arith.constant 2 : index
    %c0_24 = arith.constant 0 : index
    %c0_25 = arith.constant 0 : index
    %31 = vector.load %arg3[%c2_23, %c0_24, %c0_25] : memref<3x1x128xf32, #tpu.memory_space<vmem>>, vector<1x1x128xf32>
    %32 = vector.shape_cast %31 : vector<1x1x128xf32> to vector<1x128xf32>
    %33 = vector.broadcast %32 : vector<1x128xf32> to vector<128x128xf32>
    %34 = arith.addf %30, %33 : vector<128x128xf32>
    %cst_26 = arith.constant 0.000000e+00 : f32
    %35 = vector.broadcast %cst_26 : f32 to vector<128x128xf32>
    %36 = arith.maximumf %34, %35 : vector<128x128xf32>
    %37 = tpu.iota {dimensions = array<i32: 0>} : vector<128x128xi32>
    %c64_i32 = arith.constant 64 : i32
    %38 = vector.broadcast %c64_i32 : i32 to vector<128x128xi32>
    %39 = arith.cmpi slt, %37, %38 : vector<128x128xi32>
    %cst_27 = arith.constant 0.000000e+00 : f32
    %40 = vector.broadcast %cst_27 : f32 to vector<128x128xf32>
    %41 = arith.select %39, %36, %40 : vector<128x128xi1>, vector<128x128xf32>
    %c0_28 = arith.constant 0 : index
    %c0_29 = arith.constant 0 : index
    %42 = vector.load %arg4[%c0_28, %c0_29] : memref<128x128xf32, #tpu.memory_space<vmem>>, vector<128x128xf32>
    tpu.vector_store %arg4[%c0_28, %c0_29], %41 {strides = array<i32>} : memref<128x128xf32, #tpu.memory_space<vmem>>, vector<128x128xf32>,
    return
  }
}

</mosaic_0001>

<bundles_post_ra>
// kernel: base_nn_forward_padded.1
= control target key start
LH: loop header
LB: loop body
LE: loop exit
PB: predicated region body
PF: predicated region fallthrough
CT: control target
= control target key end

     0   :  { %9 = vsyncpa [#allocation3], 0  ;;  %s2352_s0 = inlined_call_operand.hbm [shape: f32[128,128], index: 0, kind: input, shape index: {}]   ;;  %s2353_s1 = inlined_call_operand.hbm [shape: bf16[128,128], index: 1, kind: input, shape index: {}]   ;;  %s2354_s2 = inlined_call_operand.hbm [shape: bf16[3,128,128], index: 2, kind: input, shape index: {}]   ;;  %s2355_s3 = inlined_call_operand.vmem [shape: f32[3,1,128], index: 3, kind: input, shape index: {}]   ;;  %s2356_s4 = inlined_call_operand.vmem [shape: f32[128,128], index: 4, kind: output, shape index: {}]  }
   0x1   :  { %10 = vsyncpa [#allocation5], 0  ;;  %s1916_s15 = smov [#allocation4]   ;;  %s1846_s19 = scalar_lea.hbm %s2353_s1, 1024 }
   0x2   :  { %s28_s16 = sshll.u32 %s1916_s15, 4  ;;  %p1847_p0 = scmp.ne.s32.totalorder %s2353_s1, %s1846_s19  ;;  %s29_s16 = int_to_ptr.vmem [resolvable:$true] %s28_s16 }
   0x3   :  { %p1850_p1 = scmp.lt.u32.totalorder %s1846_s19, %s2353_s1 }
   0x5   :  { %p1852_p2 = pnand %p1850_p1, %p1847_p0 }
   0x7   :  { %1855 = shalt.err (!%p1852_p2)
}
   0x8   :  { %s1856_s24 = scalar_lea.vmem %s29_s16, 1024  ;;  %p1861_p4 = scmp.lt.s32.totalorder %s29_s16, %s29_s16 }
   0x9   :  { %p1857_p3 = scmp.ne.s32.totalorder %s29_s16, %s1856_s24  ;;  %p1862_p5 = scmp.lt.s32.totalorder %s1856_s24, %s1856_s24 }
   0xb   :  { %p1863_p6 = por %p1862_p5, %p1861_p4 }
   0xd   :  { %p1864_p7 = pnand %p1863_p6, %p1857_p3 }
   0xf   :  { %1867 = shalt.err (!%p1864_p7)
}
  0x10   :  { %s1917_s25 = smov 64   ;;  %s1918_s26 = smov 4  }
  0x11   :  { %34 = dma.hbm_to_vmem [thread:$0]  %s2353_s1, 1024, %s29_s16, [#allocation5], %s1917_s25, %s1917_s25, %s1918_s26  }
  0x12   :  { %s1919_s29 = smov [#allocation2]   ;;  %s1868_s7 = scalar_lea.hbm %s2352_s0, 2048 }
  0x13   :  { %s16_s30 = sshll.u32 %s1919_s29, 4  ;;  %p1869_p8 = scmp.ne.s32.totalorder %s2352_s0, %s1868_s7  ;;  %s17_s30 = int_to_ptr.vmem [resolvable:$true] %s16_s30 }
  0x14   :  { %p1872_p9 = scmp.lt.u32.totalorder %s1868_s7, %s2352_s0 }
  0x16   :  { %p1874_p10 = pnand %p1872_p9, %p1869_p8 }
  0x18   :  { %1877 = shalt.err (!%p1874_p10)
}
  0x19   :  { %s1878_s12 = scalar_lea.vmem %s17_s30, 2048  ;;  %p1883_p12 = scmp.lt.s32.totalorder %s17_s30, %s17_s30 }
  0x1a   :  { %p1879_p11 = scmp.ne.s32.totalorder %s17_s30, %s1878_s12  ;;  %p1884_p13 = scmp.lt.s32.totalorder %s1878_s12, %s1878_s12 }
  0x1c   :  { %p1885_p0 = por %p1884_p13, %p1883_p12 }
  0x1e   :  { %p1886_p1 = pnand %p1885_p0, %p1879_p11 }
  0x20   :  { %1889 = shalt.err (!%p1886_p1)
}
  0x21   :  { %s1920_s1 = smov 128   ;;  %s1921_s13 = smov 8  }
  0x22   :  { %22 = dma.hbm_to_vmem [thread:$0]  %s2352_s0, 2048, %s17_s30, [#allocation3], %s1920_s1, %s1920_s1, %s1921_s13  }
  0x23   :  { %s1922_s16 = smov [#allocation6]   ;;  %s1890_s20 = scalar_lea.hbm %s2354_s2, 3072 }
  0x24   :  { %s40_s17 = sshll.u32 %s1922_s16, 4  ;;  %p1891_p2 = scmp.ne.s32.totalorder %s2354_s2, %s1890_s20  ;;  %s41_s17 = int_to_ptr.vmem [resolvable:$true] %s40_s17 }
  0x25   :  { %p1894_p3 = scmp.lt.u32.totalorder %s1890_s20, %s2354_s2 }
  0x27   :  { %p1896_p4 = pnand %p1894_p3, %p1891_p2 }
  0x29   :  { %1899 = shalt.err (!%p1896_p4)
}
  0x2a   :  { %s1900_s27 = scalar_lea.vmem %s41_s17, 3072  ;;  %p1905_p6 = scmp.lt.s32.totalorder %s41_s17, %s41_s17 }
  0x2b   :  { %p1901_p5 = scmp.ne.s32.totalorder %s41_s17, %s1900_s27  ;;  %p1906_p7 = scmp.lt.s32.totalorder %s1900_s27, %s1900_s27 }
  0x2d   :  { %p1907_p8 = por %p1906_p7, %p1905_p6 }
  0x2f   :  { %p1908_p9 = pnand %p1907_p8, %p1901_p5 }
  0x31   :  { %1911 = shalt.err (!%p1908_p9)
}
  0x32   :  { %46 = dma.hbm_to_vmem [thread:$0]  %s2354_s2, 3072, %s41_s17, [#allocation5], %s1917_s25, %s1917_s25, %s1918_s26  }
  0x33   :  { %1912 = dma.done.wait [#allocation3], 2048  }
  0x34   :  { %1913 = vsyncadd [#allocation3], 4294965248 }
  0x35   :  { %1914 = dma.done.wait [#allocation5], 4096  }
  0x36   :  { %1915 = vsyncadd [#allocation5], 4294963200  ;;  %v1923_v0 = vmov 0.0   ;;  %v1814_v1 = vld [vmem:[#allocation6] sm:$0xff]   ;;  %v1815_v2 = vld [vmem:[#allocation6 + $0x8] sm:$0xff]  }
  0x37   :  { %1251 = vst [vmem:[%s2356_s4 + $0x40] sm:$0xff] %v1923_v0  ;;  %1252 = vst [vmem:[%s2356_s4 + $0x48] sm:$0xff] %v1923_v0  ;;  %1446 = vmatprep.subr.bf16.mxu0 %v1814_v1  ;;  %v1816_v3 = vld [vmem:[#allocation6 + $0x10] sm:$0xff]   ;;  %v1817_v4 = vld [vmem:[#allocation6 + $0x18] sm:$0xff]  }
  0x38   :  { %1253 = vst [vmem:[%s2356_s4 + $0x50] sm:$0xff] %v1923_v0  ;;  %1254 = vst [vmem:[%s2356_s4 + $0x58] sm:$0xff] %v1923_v0  ;;  %1447 = vmatpush3.bf16.msra.mxu0 %v1814_v1  ;;  %v1822_v5 = vld [vmem:[#allocation4] sm:$0xff]   ;;  %v1819_v7 = vld [vmem:[#allocation6 + $0x28] sm:$0xff]  }
  0x39   :  { %1255 = vst [vmem:[%s2356_s4 + $0x60] sm:$0xff] %v1923_v0  ;;  %1256 = vst [vmem:[%s2356_s4 + $0x68] sm:$0xff] %v1923_v0  ;;  %1448 = vmatprep.subr.bf16.mxu0 %v1815_v2  ;;  %1462 = vmatprep.mubr.bf16.mxu0 %v1822_v5  ;;  %v1818_v6 = vld [vmem:[#allocation6 + $0x20] sm:$0xff]   ;;  %v1831_v9 = vld [vmem:[#allocation6 + $0x48] sm:$0xff]  }
  0x3a   :  { %1257 = vst [vmem:[%s2356_s4 + $0x70] sm:$0xff] %v1923_v0  ;;  %1258 = vst [vmem:[%s2356_s4 + $0x78] sm:$0xff] %v1923_v0  ;;  %v1830_v8 = vld [vmem:[#allocation6 + $0x40] sm:$0xff]   ;;  %v1820_v10 = vld [vmem:[#allocation6 + $0x30] sm:$0xff]  }
  0x3b   :  { %1478 = vmatprep.subr.bf16.mxu1 %v1830_v8  ;;  %v1832_v11 = vld [vmem:[#allocation6 + $0x50] sm:$0xff]   ;;  %v1821_v12 = vld [vmem:[#allocation6 + $0x38] sm:$0xff]   ;;  %v1834_v14 = vld [vmem:[#allocation6 + $0x60] sm:$0xff]  }
  0x3c   :  { %1449 = vmatpush3.bf16.msra.mxu0 %v1815_v2  ;;  %1479 = vmatpush3.bf16.msra.mxu1 %v1830_v8  ;;  %v1833_v13 = vld [vmem:[#allocation6 + $0x58] sm:$0xff]   ;;  %v1823_v15 = vld [vmem:[#allocation4 + $0x8] sm:$0xff]   ;;  %v1824_v16 = vld [vmem:[#allocation4 + $0x10] sm:$0xff]  }
  0x3d   :  { %1450 = vmatprep.subr.bf16.mxu0 %v1816_v3  ;;  %1480 = vmatprep.subr.bf16.mxu1 %v1831_v9  ;;  %v1835_v17 = vld [vmem:[#allocation6 + $0x68] sm:$0xff]   ;;  %v1825_v18 = vld [vmem:[#allocation4 + $0x18] sm:$0xff]   ;;  %v1826_v19 = vld [vmem:[#allocation4 + $0x20] sm:$0xff]  }
  0x3e   :  { %v1827_v20 = vld [vmem:[#allocation4 + $0x28] sm:$0xff]   ;;  %v1828_v21 = vld [vmem:[#allocation4 + $0x30] sm:$0xff]   ;;  %v1829_v22 = vld [vmem:[#allocation4 + $0x38] sm:$0xff]  }
  0x3f   :  { %v1836_v23 = vld [vmem:[#allocation6 + $0x70] sm:$0xff]   ;;  %v1837_v24 = vld [vmem:[#allocation6 + $0x78] sm:$0xff]   ;;  %v1265_v25 = vld [vmem:[%s2355_s3] ss:$0 sm:$0xff] }
  0x40   :  { %1451 = vmatpush3.bf16.msra.mxu0 %v1816_v3  ;;  %1481 = vmatpush3.bf16.msra.mxu1 %v1831_v9 }
  0x41   :  { %1452 = vmatprep.subr.bf16.mxu0 %v1817_v4  ;;  %1482 = vmatprep.subr.bf16.mxu1 %v1832_v11 }
  0x44   :  { %1453 = vmatpush3.bf16.msra.mxu0 %v1817_v4  ;;  %1483 = vmatpush3.bf16.msra.mxu1 %v1832_v11 }
  0x45   :  { %1454 = vmatprep.subr.bf16.mxu0 %v1818_v6  ;;  %1484 = vmatprep.subr.bf16.mxu1 %v1833_v13 }
  0x48   :  { %1455 = vmatpush3.bf16.msra.mxu0 %v1818_v6  ;;  %1485 = vmatpush3.bf16.msra.mxu1 %v1833_v13 }
  0x49   :  { %1456 = vmatprep.subr.bf16.mxu0 %v1819_v7  ;;  %1486 = vmatprep.subr.bf16.mxu1 %v1834_v14 }
  0x4c   :  { %1457 = vmatpush3.bf16.msra.mxu0 %v1819_v7  ;;  %1487 = vmatpush3.bf16.msra.mxu1 %v1834_v14 }
  0x4d   :  { %1458 = vmatprep.subr.bf16.mxu0 %v1820_v10  ;;  %1488 = vmatprep.subr.bf16.mxu1 %v1835_v17 }
  0x50   :  { %1459 = vmatpush3.bf16.msra.mxu0 %v1820_v10  ;;  %1489 = vmatpush3.bf16.msra.mxu1 %v1835_v17 }
  0x51   :  { %1460 = vmatprep.subr.bf16.mxu0 %v1821_v12  ;;  %1490 = vmatprep.subr.bf16.mxu1 %v1836_v23 }
  0x54   :  { %1461 = vmatpush3.bf16.msra.mxu0 %v1821_v12  ;;  %1491 = vmatpush3.bf16.msra.mxu1 %v1836_v23 }
  0x55   :  { %1492 = vmatprep.subr.bf16.mxu1 %v1837_v24 }
  0x57   :  { %1463 = vmatmul.mubr.bf16.vlgmr.msra.gmra.mrb[0].mxu0 %v1823_v15 }
  0x58   :  { %1466 = vmatprep.mubr.bf16.mxu0 %v1824_v16  ;;  %1493 = vmatpush3.bf16.msra.mxu1 %v1837_v24 }
  0x5f   :  { %1467 = vmatmul.mubr.bf16.gmra.mrb[4].mxu0 %v1825_v18  ;;  %v2018_v18 = vld [vmem:[#allocation2] sm:$0xff] }
  0x60   :  { %1470 = vmatprep.mubr.bf16.mxu0 %v1826_v19  ;;  %v1283_v19 = vld [vmem:[%s2355_s3 + $0x1] ss:$0 sm:$0xff] }
  0x67   :  { %1471 = vmatmul.mubr.bf16.gmra.mrb[8].mxu0 %v1827_v20 }
  0x68   :  { %1474 = vmatprep.mubr.bf16.mxu0 %v1828_v21 }
  0x6f   :  { %1475 = vmatmul.mubr.bf16.gmra.mrb[12].mxu0 %v1829_v22 }
  0x70   :  { %1542 = vmatprep.mubr.f32.mxu0 %v2018_v18 }
 0x12a   :  { %v1464_v26 = vpop.f32.mrb[0].mxu0 }
 0x12b   :  { %v237_v27 = vadd.f32 %v1464_v26, %v1265_v25  ;;  %v228_v28 = vpop.f32.mrb[1].mxu0 }
 0x12c   :  { %v229_v29 = vadd.f32 %v1265_v25, %v228_v28  ;;  %v1465_v30 = vpop.f32.mrb[2].mxu0 }
 0x12d   :  { %v240_v31 = vadd.f32 %v1465_v30, %v1265_v25  ;;  %v231_v32 = vpop.f32.mrb[3].mxu0  ;;  %v293_v34 = vmax.f32 %v237_v27, 0.0 }
 0x12e   :  { %v232_v33 = vadd.f32 %v1265_v25, %v231_v32  ;;  %v291_v36 = vmax.f32 %v229_v29, 0.0 }
 0x12f   :  { %v294_v35 = vmax.f32 %v240_v31, 0.0 }
 0x130   :  { %v292_v37 = vmax.f32 %v232_v33, 0.0 }
 0x131   :  { %v308_v38 = vpack.c.bf16 %v294_v35, %v293_v34 }
 0x132   :  { %v1468_v39 = vpop.f32.mrb[4].mxu0  ;;  %v307_v40 = vpack.c.bf16 %v292_v37, %v291_v36 }
 0x133   :  { %v253_v41 = vadd.f32 %v1468_v39, %v1265_v25  ;;  %v244_v42 = vpop.f32.mrb[5].mxu0 }
 0x134   :  { %v245_v43 = vadd.f32 %v1265_v25, %v244_v42  ;;  %v1469_v44 = vpop.f32.mrb[6].mxu0  ;;  %1494 = vmatprep.mubr.bf16.mxu1 %v307_v40 }
 0x135   :  { %v256_v45 = vadd.f32 %v1469_v44, %v1265_v25  ;;  %v247_v46 = vpop.f32.mrb[7].mxu0  ;;  %1495 = vmatmul.mubr.bf16.vlgmr.msra.gmra.mrb[0].mxu1 %v308_v38  ;;  %v297_v48 = vmax.f32 %v253_v41, 0.0 }
 0x136   :  { %v248_v47 = vadd.f32 %v1265_v25, %v247_v46  ;;  %v295_v50 = vmax.f32 %v245_v43, 0.0 }
 0x137   :  { %v298_v49 = vmax.f32 %v256_v45, 0.0 }
 0x138   :  { %v296_v51 = vmax.f32 %v248_v47, 0.0 }
 0x139   :  { %v310_v52 = vpack.c.bf16 %v298_v49, %v297_v48 }
 0x13a   :  { %v309_v53 = vpack.c.bf16 %v296_v51, %v295_v50  ;;  %v1472_v54 = vpop.f32.mrb[8].mxu0 }
 0x13b   :  { %v269_v55 = vadd.f32 %v1472_v54, %v1265_v25  ;;  %v260_v56 = vpop.f32.mrb[9].mxu0 }
 0x13c   :  { %v261_v57 = vadd.f32 %v1265_v25, %v260_v56  ;;  %v1473_v58 = vpop.f32.mrb[10].mxu0  ;;  %1498 = vmatprep.mubr.bf16.mxu1 %v309_v53 }
 0x13d   :  { %v272_v59 = vadd.f32 %v1473_v58, %v1265_v25  ;;  %v263_v60 = vpop.f32.mrb[11].mxu0  ;;  %1499 = vmatmul.mubr.bf16.gmra.mrb[4].mxu1 %v310_v52  ;;  %v301_v62 = vmax.f32 %v269_v55, 0.0 }
 0x13e   :  { %v264_v61 = vadd.f32 %v1265_v25, %v263_v60  ;;  %v299_v0 = vmax.f32 %v261_v57, 0.0 }
 0x13f   :  { %v302_v63 = vmax.f32 %v272_v59, 0.0 }
 0x140   :  { %v300_v1 = vmax.f32 %v264_v61, 0.0 }
 0x141   :  { %v312_v2 = vpack.c.bf16 %v302_v63, %v301_v62 }
 0x142   :  { %v311_v3 = vpack.c.bf16 %v300_v1, %v299_v0  ;;  %v1476_v4 = vpop.f32.mrb[12].mxu0 }
 0x143   :  { %v285_v5 = vadd.f32 %v1476_v4, %v1265_v25  ;;  %v276_v6 = vpop.f32.mrb[13].mxu0 }
 0x144   :  { %v277_v7 = vadd.f32 %v1265_v25, %v276_v6  ;;  %v1477_v8 = vpop.f32.mrb[14].mxu0  ;;  %1502 = vmatprep.mubr.bf16.mxu1 %v311_v3 }
 0x145   :  { %v288_v9 = vadd.f32 %v1477_v8, %v1265_v25  ;;  %v279_v10 = vpop.f32.mrb[15].mxu0  ;;  %1503 = vmatmul.mubr.bf16.gmra.mrb[8].mxu1 %v312_v2  ;;  %v305_v12 = vmax.f32 %v285_v5, 0.0 }
 0x146   :  { %v280_v11 = vadd.f32 %v1265_v25, %v279_v10  ;;  %v303_v14 = vmax.f32 %v277_v7, 0.0 }
 0x147   :  { %v306_v13 = vmax.f32 %v288_v9, 0.0 }
 0x148   :  { %v304_v15 = vmax.f32 %v280_v11, 0.0 }
 0x149   :  { %v314_v16 = vpack.c.bf16 %v306_v13, %v305_v12  ;;  %v2105_v12 = vld [vmem:[#allocation2 + $0x8] sm:$0xff]  ;;  %v2107_v13 = vld [vmem:[#allocation2 + $0x10] sm:$0xff] }
 0x14a   :  { %v313_v17 = vpack.c.bf16 %v304_v15, %v303_v14  ;;  %v2111_v14 = vld [vmem:[#allocation2 + $0x18] sm:$0xff]  ;;  %v2113_v15 = vld [vmem:[#allocation2 + $0x20] sm:$0xff] }
 0x14c   :  { %1506 = vmatprep.mubr.bf16.mxu1 %v313_v17  ;;  %v2119_v17 = vld [vmem:[#allocation2 + $0x30] sm:$0xff] }
 0x14d   :  { %1507 = vmatmul.mubr.bf16.gmra.mrb[12].mxu1 %v314_v16  ;;  %v2117_v16 = vld [vmem:[#allocation2 + $0x28] sm:$0xff] }
 0x14e   :  { %1598 = vmatprep.mubr.f32.mxu1 %v2018_v18 }
 0x208   :  { %v1496_v20 = vpop.f32.mrb[0].mxu1 }
 0x209   :  { %v422_v21 = vpop.f32.mrb[1].mxu1  ;;  %v2029_v26 = vadd.f32 %v1496_v20, %v1283_v19  ;;  %v2125_v20 = vld [vmem:[#allocation2 + $0x40] sm:$0xff] }
 0x20a   :  { %v2025_v22 = vadd.f32 %v1283_v19, %v422_v21  ;;  %v1497_v23 = vpop.f32.mrb[2].mxu1  ;;  %v2129_v21 = vld [vmem:[#allocation2 + $0x48] sm:$0xff] }
 0x20b   :  { %v2027_v24 = vadd.f32 %v1497_v23, %v1283_v19  ;;  %v425_v25 = vpop.f32.mrb[3].mxu1  ;;  %v487_v31 = vmax.f32 %v2029_v26, 0.0  ;;  %v2131_v23 = vld [vmem:[#allocation2 + $0x50] sm:$0xff] }
 0x20c   :  { %v2031_v27 = vadd.f32 %v1283_v19, %v425_v25  ;;  %v485_v28 = vmax.f32 %v2025_v22, 0.0  ;;  %v2135_v25 = vld [vmem:[#allocation2 + $0x58] sm:$0xff] }
 0x20d   :  { %v488_v29 = vmax.f32 %v2027_v24, 0.0 }
 0x20e   :  { %v486_v30 = vmax.f32 %v2031_v27, 0.0 }
 0x20f   :  { %v1714_v35 = vpack.c.bf16 %v488_v29, %v487_v31 }
 0x210   :  { %v1710_v32 = vpack.c.bf16 %v486_v30, %v485_v28  ;;  %v1500_v33 = vpop.f32.mrb[4].mxu1 }
 0x211   :  { %v438_v34 = vpop.f32.mrb[5].mxu1  ;;  %v2049_v40 = vadd.f32 %v1500_v33, %v1283_v19  ;;  %v2141_v33 = vld [vmem:[#allocation2 + $0x68] sm:$0xff] }
 0x212   :  { %v2045_v36 = vadd.f32 %v1283_v19, %v438_v34  ;;  %v1501_v37 = vpop.f32.mrb[6].mxu1  ;;  %1711 = vmatprep.subr.bf16.mxu0 %v1710_v32  ;;  %v2143_v34 = vld [vmem:[#allocation2 + $0x70] sm:$0xff] }
 0x213   :  { %v2047_v38 = vadd.f32 %v1501_v37, %v1283_v19  ;;  %v441_v39 = vpop.f32.mrb[7].mxu1  ;;  %1713 = vmatpush3.bf16.msra.mxu0 %v1710_v32  ;;  %v491_v45 = vmax.f32 %v2049_v40, 0.0  ;;  %v2137_v32 = vld [vmem:[#allocation2 + $0x60] sm:$0xff] }
 0x214   :  { %v2051_v41 = vadd.f32 %v1283_v19, %v441_v39  ;;  %1715 = vmatprep.subr.bf16.mxu0 %v1714_v35  ;;  %v489_v42 = vmax.f32 %v2045_v36, 0.0 }
 0x215   :  { %v492_v43 = vmax.f32 %v2047_v38, 0.0 }
 0x216   :  { %v490_v44 = vmax.f32 %v2051_v41, 0.0 }
 0x217   :  { %1717 = vmatpush3.bf16.msra.mxu0 %v1714_v35  ;;  %v1722_v49 = vpack.c.bf16 %v492_v43, %v491_v45  ;;  %v2147_v35 = vld [vmem:[#allocation2 + $0x78] sm:$0xff] }
 0x218   :  { %v1718_v46 = vpack.c.bf16 %v490_v44, %v489_v42  ;;  %v1504_v47 = vpop.f32.mrb[8].mxu1 }
 0x219   :  { %v454_v48 = vpop.f32.mrb[9].mxu1  ;;  %v2069_v54 = vadd.f32 %v1504_v47, %v1283_v19 }
 0x21a   :  { %v2065_v50 = vadd.f32 %v1283_v19, %v454_v48  ;;  %v1505_v51 = vpop.f32.mrb[10].mxu1  ;;  %1719 = vmatprep.subr.bf16.mxu0 %v1718_v46 }
 0x21b   :  { %v2067_v52 = vadd.f32 %v1505_v51, %v1283_v19  ;;  %v457_v53 = vpop.f32.mrb[11].mxu1  ;;  %1721 = vmatpush3.bf16.msra.mxu0 %v1718_v46  ;;  %v2361_v59 = vmax.f32 %v2069_v54, 0.0 }
 0x21c   :  { %v2071_v55 = vadd.f32 %v1283_v19, %v457_v53  ;;  %1723 = vmatprep.subr.bf16.mxu0 %v1722_v49  ;;  %v2363_v56 = vmax.f32 %v2065_v50, 0.0  ;;  %v2366_v38 = vmax.f32 %v2065_v50, 0.0 }
 0x21d   :  { %v2362_v57 = vmax.f32 %v2067_v52, 0.0 }
 0x21e   :  { %v2364_v58 = vmax.f32 %v2071_v55, 0.0 }
 0x21f   :  { %1725 = vmatpush3.bf16.msra.mxu0 %v1722_v49  ;;  %v1730_v63 = vpack.c.bf16 %v2362_v57, %v2361_v59  ;;  %v1843_v59 = vld [vmem:[#allocation6 + $0xa8] sm:$0xff]  }
 0x220   :  { %v1726_v60 = vpack.c.bf16 %v2364_v58, %v2363_v56  ;;  %v1508_v61 = vpop.f32.mrb[12].mxu1 }
 0x221   :  { %v470_v62 = vpop.f32.mrb[13].mxu1  ;;  %v2089_v4 = vadd.f32 %v1508_v61, %v1283_v19 }
 0x222   :  { %v2085_v0 = vadd.f32 %v1283_v19, %v470_v62  ;;  %v1509_v1 = vpop.f32.mrb[14].mxu1  ;;  %1727 = vmatprep.subr.bf16.mxu0 %v1726_v60 }
 0x223   :  { %v2087_v2 = vadd.f32 %v1509_v1, %v1283_v19  ;;  %v473_v3 = vpop.f32.mrb[15].mxu1  ;;  %1729 = vmatpush3.bf16.msra.mxu0 %v1726_v60  ;;  %v2357_v9 = vmax.f32 %v2089_v4, 0.0 }
 0x224   :  { %v2091_v5 = vadd.f32 %v1283_v19, %v473_v3  ;;  %1731 = vmatprep.subr.bf16.mxu0 %v1730_v63  ;;  %v2359_v6 = vmax.f32 %v2085_v0, 0.0  ;;  %v2123_v19 = vld [vmem:[#allocation2 + $0x38] sm:$0xff] }
 0x225   :  { %v2358_v7 = vmax.f32 %v2087_v2, 0.0 }
 0x226   :  { %v2360_v8 = vmax.f32 %v2091_v5, 0.0 }
 0x227   :  { %1733 = vmatpush3.bf16.msra.mxu0 %v1730_v63  ;;  %v1738_v11 = vpack.c.bf16 %v2358_v7, %v2357_v9 }
 0x228   :  { %v1734_v10 = vpack.c.bf16 %v2360_v8, %v2359_v6  ;;  %v1841_v6 = vld [vmem:[#allocation6 + $0x98] sm:$0xff]   ;;  %v1842_v8 = vld [vmem:[#allocation6 + $0xa0] sm:$0xff]  }
 0x22a   :  { %1735 = vmatprep.subr.bf16.mxu0 %v1734_v10 }
 0x22b   :  { %1737 = vmatpush3.bf16.msra.mxu0 %v1734_v10 }
 0x22c   :  { %1739 = vmatprep.subr.bf16.mxu0 %v1738_v11 }
 0x22f   :  { %1741 = vmatpush3.bf16.msra.mxu0 %v1738_v11 }
 0x232   :  { %1543 = vmatmul.mubr.f32.vlgmr.msra.gmra.mrb[16].mxu0 %v2105_v12 }
 0x233   :  { %1545 = vmatprep.mubr.f32.mxu0 %v2107_v13 }
 0x236   :  { %1546 = vmatmul.mubr.f32.gmra.mrb[18].mxu0 %v2111_v14 }
 0x237   :  { %1548 = vmatprep.mubr.f32.mxu0 %v2113_v15 }
 0x23a   :  { %1549 = vmatmul.mubr.f32.gmra.mrb[20].mxu0 %v2117_v16 }
 0x23b   :  { %1551 = vmatprep.mubr.f32.mxu0 %v2119_v17 }
 0x23e   :  { %1552 = vmatmul.mubr.f32.gmra.mrb[22].mxu0 %v2123_v19 }
 0x23f   :  { %1554 = vmatprep.mubr.f32.mxu0 %v2125_v20 }
 0x242   :  { %1555 = vmatmul.mubr.f32.gmra.mrb[24].mxu0 %v2129_v21 }
 0x243   :  { %1557 = vmatprep.mubr.f32.mxu0 %v2131_v23 }
 0x246   :  { %1558 = vmatmul.mubr.f32.gmra.mrb[26].mxu0 %v2135_v25 }
 0x247   :  { %1560 = vmatprep.mubr.f32.mxu0 %v2137_v32 }
 0x24a   :  { %1561 = vmatmul.mubr.f32.gmra.mrb[28].mxu0 %v2141_v33 }
 0x24b   :  { %1563 = vmatprep.mubr.f32.mxu0 %v2143_v34 }
 0x24e   :  { %1564 = vmatmul.mubr.f32.gmra.mrb[30].mxu0 %v2147_v35 }
 0x24f   :  { %1654 = vmatprep.mubr.f32.mxu0 %v2018_v18 }
 0x305   :  { %v2151_v37 = vpop.f32.mrb[16].mxu0 }
 0x306   :  { %v2153_v39 = vpop.f32.mrb[17].mxu0  ;;  %v663_v57 = vadd.f32 %v2151_v37, %v486_v30 }
 0x307   :  { %v1742_v46 = vpack.c.bf16 %v2151_v37, %v2153_v39 }
 0x309   :  { %v2157_v47 = vpop.f32.mrb[18].mxu0  ;;  %1743 = vmatprep.subr.bf16.mxu1 %v1742_v46 }
 0x30a   :  { %v2159_v48 = vpop.f32.mrb[19].mxu0  ;;  %1745 = vmatpush3.bf16.msra.mxu1 %v1742_v46 }
 0x30b   :  { %v1746_v49 = vpack.c.bf16 %v2157_v47, %v2159_v48  ;;  %v664_v27 = vadd.f32 %v2159_v48, %v487_v31 }
 0x30d   :  { %v2163_v51 = vpop.f32.mrb[20].mxu0  ;;  %1747 = vmatprep.subr.bf16.mxu1 %v1746_v49 }
 0x30e   :  { %v2165_v18 = vpop.f32.mrb[21].mxu0  ;;  %1749 = vmatpush3.bf16.msra.mxu1 %v1746_v49  ;;  %v667_v37 = vadd.f32 %v2163_v51, %v490_v44 }
 0x30f   :  { %v1750_v53 = vpack.c.bf16 %v2163_v51, %v2165_v18  ;;  %v666_v24 = vadd.f32 %v2165_v18, %v489_v42 }
 0x311   :  { %v2169_v60 = vpop.f32.mrb[22].mxu0  ;;  %1751 = vmatprep.subr.bf16.mxu1 %v1750_v53 }
 0x312   :  { %v2171_v61 = vpop.f32.mrb[23].mxu0  ;;  %1753 = vmatpush3.bf16.msra.mxu1 %v1750_v53  ;;  %v669_v48 = vadd.f32 %v2169_v60, %v492_v43 }
 0x313   :  { %v1754_v62 = vpack.c.bf16 %v2169_v60, %v2171_v61  ;;  %v668_v41 = vadd.f32 %v2171_v61, %v491_v45 }
 0x315   :  { %v2175_v63 = vpop.f32.mrb[24].mxu0  ;;  %1755 = vmatprep.subr.bf16.mxu1 %v1754_v62 }
 0x316   :  { %v2177_v1 = vpop.f32.mrb[25].mxu0  ;;  %1757 = vmatpush3.bf16.msra.mxu1 %v1754_v62 }
 0x317   :  { %v1758_v3 = vpack.c.bf16 %v2175_v63, %v2177_v1  ;;  %v670_v43 = vadd.f32 %v2177_v1, %v2366_v38 }
 0x319   :  { %v2181_v10 = vpop.f32.mrb[26].mxu0  ;;  %1759 = vmatprep.subr.bf16.mxu1 %v1758_v3 }
 0x31a   :  { %v2183_v11 = vpop.f32.mrb[27].mxu0  ;;  %1761 = vmatpush3.bf16.msra.mxu1 %v1758_v3 }
 0x31b   :  { %v1762_v46 = vpack.c.bf16 %v2181_v10, %v2183_v11 }
 0x31d   :  { %v2187_v49 = vpop.f32.mrb[28].mxu0  ;;  %1763 = vmatprep.subr.bf16.mxu1 %v1762_v46 }
 0x31e   :  { %v2189_v53 = vpop.f32.mrb[29].mxu0  ;;  %1765 = vmatpush3.bf16.msra.mxu1 %v1762_v46  ;;  %v1838_v46 = vld [vmem:[#allocation6 + $0x80] sm:$0xff]  }
 0x31f   :  { %v1766_v62 = vpack.c.bf16 %v2187_v49, %v2189_v53 }
 0x321   :  { %v2193_v9 = vpop.f32.mrb[30].mxu0  ;;  %1767 = vmatprep.subr.bf16.mxu1 %v1766_v62 }
 0x322   :  { %v2195_v7 = vpop.f32.mrb[31].mxu0  ;;  %1769 = vmatpush3.bf16.msra.mxu1 %v1766_v62  ;;  %v1839_v62 = vld [vmem:[#allocation6 + $0x88] sm:$0xff]  }
 0x323   :  { %v1770_v3 = vpack.c.bf16 %v2193_v9, %v2195_v7 }
 0x325   :  { %1771 = vmatprep.subr.bf16.mxu1 %v1770_v3 }
 0x326   :  { %1773 = vmatpush3.bf16.msra.mxu1 %v1770_v3  ;;  %v1840_v3 = vld [vmem:[#allocation6 + $0x90] sm:$0xff]  }
 0x327   :  { %1678 = vmatprep.subr.bf16.mxu1 %v1838_v46 }
 0x329   :  { %1599 = vmatmul.mubr.f32.vlgmr.msra.gmra.mrb[16].mxu1 %v2105_v12 }
 0x32a   :  { %1601 = vmatprep.mubr.f32.mxu1 %v2107_v13  ;;  %1679 = vmatpush3.bf16.msra.mxu1 %v1838_v46  ;;  %v662_v46 = vadd.f32 %v2153_v39, %v485_v28 }
 0x32b   :  { %1680 = vmatprep.subr.bf16.mxu1 %v1839_v62 }
 0x32d   :  { %1602 = vmatmul.mubr.f32.gmra.mrb[18].mxu1 %v2111_v14 }
 0x32e   :  { %1604 = vmatprep.mubr.f32.mxu1 %v2113_v15  ;;  %1681 = vmatpush3.bf16.msra.mxu1 %v1839_v62 }
 0x32f   :  { %1682 = vmatprep.subr.bf16.mxu1 %v1840_v3 }
 0x331   :  { %1605 = vmatmul.mubr.f32.gmra.mrb[20].mxu1 %v2117_v16 }
 0x332   :  { %1607 = vmatprep.mubr.f32.mxu1 %v2119_v17  ;;  %1683 = vmatpush3.bf16.msra.mxu1 %v1840_v3 }
 0x333   :  { %1684 = vmatprep.subr.bf16.mxu1 %v1841_v6 }
 0x335   :  { %1608 = vmatmul.mubr.f32.gmra.mrb[22].mxu1 %v2123_v19 }
 0x336   :  { %1610 = vmatprep.mubr.f32.mxu1 %v2125_v20  ;;  %1685 = vmatpush3.bf16.msra.mxu1 %v1841_v6 }
 0x337   :  { %1686 = vmatprep.subr.bf16.mxu1 %v1842_v8 }
 0x339   :  { %1611 = vmatmul.mubr.f32.gmra.mrb[24].mxu1 %v2129_v21 }
 0x33a   :  { %1613 = vmatprep.mubr.f32.mxu1 %v2131_v23  ;;  %1687 = vmatpush3.bf16.msra.mxu1 %v1842_v8  ;;  %v665_v8 = vadd.f32 %v2157_v47, %v488_v29 }
 0x33b   :  { %1688 = vmatprep.subr.bf16.mxu1 %v1843_v59 }
 0x33d   :  { %1614 = vmatmul.mubr.f32.gmra.mrb[26].mxu1 %v2135_v25 }
 0x33e   :  { %1616 = vmatprep.mubr.f32.mxu1 %v2137_v32  ;;  %1689 = vmatpush3.bf16.msra.mxu1 %v1843_v59 }
 0x341   :  { %1617 = vmatmul.mubr.f32.gmra.mrb[28].mxu1 %v2141_v33 }
 0x342   :  { %1619 = vmatprep.mubr.f32.mxu1 %v2143_v34 }
 0x345   :  { %1620 = vmatmul.mubr.f32.gmra.mrb[30].mxu1 %v2147_v35 }
 0x3fc   :  { %v1600_v62 = vpop.f32.mrb[16].mxu1 }
 0x3fd   :  { %v2220_v56 = vadd.f32 %v1600_v62, %v663_v57  ;;  %v744_v3 = vpop.f32.mrb[17].mxu1 }
 0x3fe   :  { %v2222_v58 = vadd.f32 %v744_v3, %v662_v46  ;;  %v1774_v6 = vpack.c.bf16 %v1600_v62, %v744_v3  ;;  %v2365_v46 = vmax.f32 %v2071_v55, 0.0  ;;  %v2368_v55 = vmax.f32 %v2069_v54, 0.0 }
 0x400   :  { %v1603_v30 = vpop.f32.mrb[18].mxu1  ;;  %1775 = vmatprep.subr.bf16.mxu0 %v1774_v6  ;;  %v671_v62 = vadd.f32 %v2175_v63, %v2365_v46  ;;  %v672_v63 = vadd.f32 %v2183_v11, %v2368_v55 }
 0x401   :  { %v2230_v22 = vadd.f32 %v1603_v30, %v665_v8  ;;  %v754_v28 = vpop.f32.mrb[19].mxu1  ;;  %1777 = vmatpush3.bf16.msra.mxu0 %v1774_v6  ;;  %v2367_v6 = vmax.f32 %v2067_v52, 0.0  ;;  %v2370_v52 = vmax.f32 %v2085_v0, 0.0 }
 0x402   :  { %v2232_v57 = vadd.f32 %v754_v28, %v664_v27  ;;  %v1778_v59 = vpack.c.bf16 %v1603_v30, %v754_v28 }
 0x403   :  { %v673_v8 = vadd.f32 %v2181_v10, %v2367_v6  ;;  %v674_v10 = vadd.f32 %v2189_v53, %v2370_v52 }
 0x404   :  { %v1606_v26 = vpop.f32.mrb[20].mxu1  ;;  %1779 = vmatprep.subr.bf16.mxu0 %v1778_v59 }
 0x405   :  { %v2240_v29 = vadd.f32 %v1606_v26, %v667_v37  ;;  %v764_v31 = vpop.f32.mrb[21].mxu1  ;;  %1781 = vmatpush3.bf16.msra.mxu0 %v1778_v59  ;;  %v2369_v59 = vmax.f32 %v2091_v5, 0.0  ;;  %v2372_v5 = vmax.f32 %v2089_v4, 0.0  ;;  %v1845_v4 = vld [vmem:[#allocation6 + $0xb8] sm:$0xff]  }
 0x406   :  { %v2242_v39 = vadd.f32 %v764_v31, %v666_v24  ;;  %v1782_v47 = vpack.c.bf16 %v1606_v26, %v764_v31 }
 0x407   :  { %v675_v37 = vadd.f32 %v2187_v49, %v2369_v59  ;;  %v676_v49 = vadd.f32 %v2195_v7, %v2372_v5 }
 0x408   :  { %v1609_v36 = vpop.f32.mrb[22].mxu1  ;;  %1783 = vmatprep.subr.bf16.mxu0 %v1782_v47 }
 0x409   :  { %v2250_v42 = vadd.f32 %v1609_v36, %v669_v48  ;;  %v774_v44 = vpop.f32.mrb[23].mxu1  ;;  %1785 = vmatpush3.bf16.msra.mxu0 %v1782_v47  ;;  %v2371_v47 = vmax.f32 %v2087_v2, 0.0  ;;  %v1844_v2 = vld [vmem:[#allocation6 + $0xb0] sm:$0xff]  }
 0x40a   :  { %v2252_v51 = vadd.f32 %v774_v44, %v668_v41  ;;  %v1786_v18 = vpack.c.bf16 %v1609_v36, %v774_v44  ;;  %1690 = vmatprep.subr.bf16.mxu1 %v1844_v2 }
 0x40b   :  { %v677_v48 = vadd.f32 %v2193_v9, %v2371_v47  ;;  %1691 = vmatpush3.bf16.msra.mxu1 %v1844_v2 }
 0x40c   :  { %v1612_v40 = vpop.f32.mrb[24].mxu1  ;;  %1787 = vmatprep.subr.bf16.mxu0 %v1786_v18  ;;  %1692 = vmatprep.subr.bf16.mxu1 %v1845_v4 }
 0x40d   :  { %v2260_v45 = vadd.f32 %v1612_v40, %v671_v62  ;;  %v784_v60 = vpop.f32.mrb[25].mxu1  ;;  %1789 = vmatpush3.bf16.msra.mxu0 %v1786_v18 }
 0x40e   :  { %v2262_v61 = vadd.f32 %v784_v60, %v670_v43  ;;  %v1790_v3 = vpack.c.bf16 %v1612_v40, %v784_v60 }
 0x40f   :  { %1693 = vmatpush3.bf16.msra.mxu1 %v1845_v4 }
 0x410   :  { %v1615_v50 = vpop.f32.mrb[26].mxu1  ;;  %1791 = vmatprep.subr.bf16.mxu0 %v1790_v3 }
 0x411   :  { %v2270_v1 = vadd.f32 %v1615_v50, %v673_v8  ;;  %v794_v27 = vpop.f32.mrb[27].mxu1  ;;  %1793 = vmatpush3.bf16.msra.mxu0 %v1790_v3 }
 0x412   :  { %v2272_v30 = vadd.f32 %v794_v27, %v672_v63  ;;  %v1794_v28 = vpack.c.bf16 %v1615_v50, %v794_v27 }
 0x414   :  { %v1618_v54 = vpop.f32.mrb[28].mxu1  ;;  %1795 = vmatprep.subr.bf16.mxu0 %v1794_v28 }
 0x415   :  { %v2280_v11 = vadd.f32 %v1618_v54, %v675_v37  ;;  %v804_v24 = vpop.f32.mrb[29].mxu1  ;;  %1797 = vmatpush3.bf16.msra.mxu0 %v1794_v28 }
 0x416   :  { %v2282_v26 = vadd.f32 %v804_v24, %v674_v10  ;;  %v1798_v31 = vpack.c.bf16 %v1618_v54, %v804_v24 }
 0x418   :  { %v1621_v0 = vpop.f32.mrb[30].mxu1  ;;  %1799 = vmatprep.subr.bf16.mxu0 %v1798_v31 }
 0x419   :  { %v2290_v53 = vadd.f32 %v1621_v0, %v677_v48  ;;  %v814_v41 = vpop.f32.mrb[31].mxu1  ;;  %1801 = vmatpush3.bf16.msra.mxu0 %v1798_v31 }
 0x41a   :  { %v2292_v36 = vadd.f32 %v814_v41, %v676_v49  ;;  %v1802_v44 = vpack.c.bf16 %v1621_v0, %v814_v41 }
 0x41c   :  { %1803 = vmatprep.subr.bf16.mxu0 %v1802_v44 }
 0x41d   :  { %1805 = vmatpush3.bf16.msra.mxu0 %v1802_v44 }
 0x420   :  { %1655 = vmatmul.mubr.f32.vlgmr.msra.gmra.mrb[32].mxu0 %v2105_v12 }
 0x421   :  { %1657 = vmatprep.mubr.f32.mxu0 %v2107_v13 }
 0x424   :  { %1658 = vmatmul.mubr.f32.gmra.mrb[34].mxu0 %v2111_v14 }
 0x425   :  { %1660 = vmatprep.mubr.f32.mxu0 %v2113_v15 }
 0x428   :  { %1661 = vmatmul.mubr.f32.gmra.mrb[36].mxu0 %v2117_v16 }
 0x429   :  { %1663 = vmatprep.mubr.f32.mxu0 %v2119_v17 }
 0x42c   :  { %1664 = vmatmul.mubr.f32.gmra.mrb[38].mxu0 %v2123_v19 }
 0x42d   :  { %1666 = vmatprep.mubr.f32.mxu0 %v2125_v20 }
 0x430   :  { %1667 = vmatmul.mubr.f32.gmra.mrb[40].mxu0 %v2129_v21 }
 0x431   :  { %1669 = vmatprep.mubr.f32.mxu0 %v2131_v23 }
 0x434   :  { %1670 = vmatmul.mubr.f32.gmra.mrb[42].mxu0 %v2135_v25 }
 0x435   :  { %1672 = vmatprep.mubr.f32.mxu0 %v2137_v32 }
 0x438   :  { %1673 = vmatmul.mubr.f32.gmra.mrb[44].mxu0 %v2141_v33 }
 0x439   :  { %1675 = vmatprep.mubr.f32.mxu0 %v2143_v34 }
 0x43c   :  { %1676 = vmatmul.mubr.f32.gmra.mrb[46].mxu0 %v2147_v35 }
 0x4f3   :  { %v1656_v7 = vpop.f32.mrb[32].mxu0 }
 0x4f4   :  { %v985_v9 = vadd.f32 %v1656_v7, %v2220_v56  ;;  %v905_v12 = vpop.f32.mrb[33].mxu0 }
 0x4f5   :  { %v984_v13 = vadd.f32 %v905_v12, %v2222_v58 }
 0x4f7   :  { %v1000_v14 = vpack.c.bf16 %v985_v9, %v984_v13  ;;  %v1659_v15 = vpop.f32.mrb[34].mxu0 }
 0x4f8   :  { %v987_v16 = vadd.f32 %v1659_v15, %v2230_v22  ;;  %v915_v17 = vpop.f32.mrb[35].mxu0 }
 0x4f9   :  { %v986_v19 = vadd.f32 %v915_v17, %v2232_v57  ;;  %1694 = vmatprep.mubr.bf16.mxu1 %v1000_v14 }
 0x4fb   :  { %v1001_v20 = vpack.c.bf16 %v987_v16, %v986_v19  ;;  %v1662_v21 = vpop.f32.mrb[36].mxu0 }
 0x4fc   :  { %v989_v23 = vadd.f32 %v1662_v21, %v2240_v29  ;;  %v925_v25 = vpop.f32.mrb[37].mxu0 }
 0x4fd   :  { %v988_v32 = vadd.f32 %v925_v25, %v2242_v39  ;;  %1695 = vmatmul.mubr.bf16.vlgmr.msra.gmra.mrb[32].mxu1 %v1001_v20 }
 0x4ff   :  { %v1002_v56 = vpack.c.bf16 %v989_v23, %v988_v32  ;;  %v1665_v33 = vpop.f32.mrb[38].mxu0 }
 0x500   :  { %v991_v58 = vadd.f32 %v1665_v33, %v2250_v42  ;;  %v935_v34 = vpop.f32.mrb[39].mxu0 }
 0x501   :  { %v990_v35 = vadd.f32 %v935_v34, %v2252_v51  ;;  %1698 = vmatprep.mubr.bf16.mxu1 %v1002_v56 }
 0x503   :  { %v1003_v22 = vpack.c.bf16 %v991_v58, %v990_v35  ;;  %v1668_v18 = vpop.f32.mrb[40].mxu0 }
 0x504   :  { %v993_v57 = vadd.f32 %v1668_v18, %v2260_v45  ;;  %v945_v46 = vpop.f32.mrb[41].mxu0 }
 0x505   :  { %v992_v62 = vadd.f32 %v945_v46, %v2262_v61  ;;  %1699 = vmatmul.mubr.bf16.gmra.mrb[36].mxu1 %v1003_v22 }
 0x507   :  { %v1004_v29 = vpack.c.bf16 %v993_v57, %v992_v62  ;;  %v1671_v38 = vpop.f32.mrb[42].mxu0 }
 0x508   :  { %v995_v39 = vadd.f32 %v1671_v38, %v2270_v1  ;;  %v955_v43 = vpop.f32.mrb[43].mxu0  ;;  %v1293_v1 = vld [vmem:[%s2355_s3 + $0x2] ss:$0 sm:$0xff] }
 0x509   :  { %v994_v40 = vadd.f32 %v955_v43, %v2272_v30  ;;  %1702 = vmatprep.mubr.bf16.mxu1 %v1004_v29 }
 0x50b   :  { %v1005_v42 = vpack.c.bf16 %v995_v39, %v994_v40  ;;  %v1674_v60 = vpop.f32.mrb[44].mxu0 }
 0x50c   :  { %v997_v51 = vadd.f32 %v1674_v60, %v2280_v11  ;;  %v965_v3 = vpop.f32.mrb[45].mxu0 }
 0x50d   :  { %v996_v6 = vadd.f32 %v965_v3, %v2282_v26  ;;  %1703 = vmatmul.mubr.bf16.gmra.mrb[40].mxu1 %v1005_v42 }
 0x50f   :  { %v1006_v45 = vpack.c.bf16 %v997_v51, %v996_v6  ;;  %v1677_v8 = vpop.f32.mrb[46].mxu0 }
 0x510   :  { %v999_v61 = vadd.f32 %v1677_v8, %v2290_v53  ;;  %v975_v55 = vpop.f32.mrb[47].mxu0 }
 0x511   :  { %v998_v63 = vadd.f32 %v975_v55, %v2292_v36  ;;  %1706 = vmatprep.mubr.bf16.mxu1 %v1006_v45 }
 0x513   :  { %v1007_v50 = vpack.c.bf16 %v999_v61, %v998_v63 }
 0x515   :  { %1707 = vmatmul.mubr.bf16.gmra.mrb[44].mxu1 %v1007_v50 }
 0x5d0   :  { %v1696_v27 = vpop.f32.mrb[32].mxu1 }
 0x5d1   :  { %v1124_v30 = vadd.f32 %v1696_v27, %v1293_v1  ;;  %v1115_v28 = vpop.f32.mrb[33].mxu1 }
 0x5d2   :  { %v1116_v59 = vadd.f32 %v1293_v1, %v1115_v28  ;;  %v1697_v37 = vpop.f32.mrb[34].mxu1 }
 0x5d3   :  { %v1180_v52 = vmax.f32 %v1124_v30, 0.0  ;;  %v1127_v10 = vadd.f32 %v1697_v37, %v1293_v1  ;;  %v1118_v54 = vpop.f32.mrb[35].mxu1 }
 0x5d4   :  { %v1178_v11 = vmax.f32 %v1116_v59, 0.0  ;;  %v1119_v24 = vadd.f32 %v1293_v1, %v1118_v54 }
 0x5d5   :  { %1245 = vst [vmem:[%s2356_s4 + $0x10] sm:$0xff] %v1180_v52  ;;  %v1181_v26 = vmax.f32 %v1127_v10, 0.0 }
 0x5d6   :  { %1243 = vst [vmem:[%s2356_s4] sm:$0xff] %v1178_v11  ;;  %v1179_v31 = vmax.f32 %v1119_v24, 0.0 }
 0x5d7   :  { %1246 = vst [vmem:[%s2356_s4 + $0x18] sm:$0xff] %v1181_v26 }
 0x5d8   :  { %1244 = vst [vmem:[%s2356_s4 + $0x8] sm:$0xff] %v1179_v31  ;;  %v1700_v47 = vpop.f32.mrb[36].mxu1 }
 0x5d9   :  { %v1140_v48 = vadd.f32 %v1700_v47, %v1293_v1  ;;  %v1131_v5 = vpop.f32.mrb[37].mxu1 }
 0x5da   :  { %v1132_v49 = vadd.f32 %v1293_v1, %v1131_v5  ;;  %v1701_v0 = vpop.f32.mrb[38].mxu1 }
 0x5db   :  { %v1184_v53 = vmax.f32 %v1140_v48, 0.0  ;;  %v1143_v41 = vadd.f32 %v1701_v0, %v1293_v1  ;;  %v1134_v36 = vpop.f32.mrb[39].mxu1 }
 0x5dc   :  { %v1182_v44 = vmax.f32 %v1132_v49, 0.0  ;;  %v1135_v2 = vadd.f32 %v1293_v1, %v1134_v36 }
 0x5dd   :  { %1249 = vst [vmem:[%s2356_s4 + $0x30] sm:$0xff] %v1184_v53  ;;  %v1185_v4 = vmax.f32 %v1143_v41, 0.0 }
 0x5de   :  { %1247 = vst [vmem:[%s2356_s4 + $0x20] sm:$0xff] %v1182_v44  ;;  %v1183_v7 = vmax.f32 %v1135_v2, 0.0 }
 0x5df   :  { %1250 = vst [vmem:[%s2356_s4 + $0x38] sm:$0xff] %v1185_v4 }
 0x5e0   :  { %1248 = vst [vmem:[%s2356_s4 + $0x28] sm:$0xff] %v1183_v7  ;;  %v1704_v9 = vpop.f32.mrb[40].mxu1 }
 0x5e1   :  { %v1147_v12 = vpop.f32.mrb[41].mxu1 }
 0x5e2   :  { %v1705_v13 = vpop.f32.mrb[42].mxu1 }
 0x5e3   :  { %v1150_v14 = vpop.f32.mrb[43].mxu1 }
 0x5e8   :  { %v1708_v15 = vpop.f32.mrb[44].mxu1 }
 0x5e9   :  { %v1163_v16 = vpop.f32.mrb[45].mxu1 }
 0x5ea   :  { %v1709_v17 = vpop.f32.mrb[46].mxu1 }
 0x5eb   :  { %v1166_v19 = vpop.f32.mrb[47].mxu1 }
 0x5ec   :  { %1263 = vsyncpa [#allocation3], 1 }
 0x5ed   :  { %1264 = vsyncpa [#allocation5], 1 }

</bundles_post_ra>
